<compile_context>
chip_gen: v6e
topology: v6e:2x2x1
jax: 0.10.0
libtpu: 0.0.40
codegen_flags: <defaults>
</compile_context>

<pallas_src>
import functools

import jax
import jax.numpy as jnp
from jax.experimental import pallas as pl
from jax.experimental.pallas import tpu as pltpu

_LANE = 128


def _round_up(x, m):
    return -(-x // m) * m


def _elayer_kernel(x_ref, w_ref, shift_ref, o_ref):
    # x_ref:     (Nb, C_in, TS)   activation tile (lane axis = spatial)
    # w_ref:     (C_out, C_in)    BN-scale-folded 1x1 conv weights (tiny const)
    # shift_ref: (C_out, 1)       folded conv-bias + BN shift
    # o_ref:     (Nb, C_out, TS)  lane-dense output tile
    c_in = x_ref.shape[1]
    w = w_ref[...]                      # (C_out, C_in)
    shift = shift_ref[...]              # (C_out, 1)

    # C_in broadcast FMAs over full-width lanes (pure VPU, fp32 accumulation).
    # Note: the (Nb,1,TS)->(Nb,C_out,TS) sublane replicate could be turned into
    # a stride-0 broadcast load, but compute slots have slack (HBM-bound), so
    # the simple form is kept.
    y = w[None, :, 0:1] * x_ref[:, 0:1, :]
    for c in range(1, c_in):
        y = y + w[None, :, c:c + 1] * x_ref[:, c:c + 1, :]

    o_ref[...] = jnp.maximum(y + shift[None], 0.0).astype(o_ref.dtype)


def _choose_tiling(n_batch, hw, *, max_tile_s, target_block_bytes, bytes_per_col):
    """Pick (batch_block, spatial_tile, grid) so each grid step moves ~1 MiB."""
    # 1) Spatial tile (lane axis): full extent if it fits, otherwise split HW
    #    into roughly equal 128-multiples so tail tiles stay byte-balanced
    #    (matters for v7x's two TensorCores sharing HBM bandwidth).
    if hw <= max_tile_s:
        tile_s = hw
    else:
        k = -(-hw // max_tile_s)                       # number of spatial tiles
        tile_s = min(max_tile_s, _round_up(-(-hw // k), _LANE))
    n_s = -(-hw // tile_s)

    # 2) Batch block: when a single spatial tile covers the image, block the
    #    batch axis so per-step bytes reach the target instead of paying the
    #    ~0.35 us fixed per-step cost once per image.
    nb = 1
    if n_s == 1 and n_batch > 1:
        want = max(1, target_block_bytes // max(1, tile_s * bytes_per_col))
        nb = min(n_batch, want)
        if nb >= n_batch:                              # keep >= 2 grid steps
            nb = -(-n_batch // 2)                      # (v7x: 2 TensorCores)
    n_b = -(-n_batch // nb)

    # 3) Single-image, single-tile case: split spatially so both cores work.
    if n_b * n_s == 1 and hw > 2 * _LANE:
        tile_s = _round_up(-(-hw // 2), _LANE)
        n_s = -(-hw // tile_s)

    return nb, tile_s, (n_b, n_s)


@functools.partial(
    jax.jit, static_argnames=("eps", "max_tile_s", "target_block_bytes"))
def elayer_forward(x_nchw, weight, bias, gamma, beta, running_mean, running_var,
                   *, eps=1e-5, max_tile_s=32768, target_block_bytes=1 << 20):
    """Forward pass of ELayer (eval-mode BatchNorm, running stats).

    x_nchw: (N, C_in, H, W) float32
    weight: (C_out, C_in)   -- 1x1 conv kernel squeezed from (C_out, C_in, 1, 1)
    bias:   (C_out,)
    gamma, beta, running_mean, running_var: (C_out,) BatchNorm2d eval params
    returns: (N, C_out, H, W) float32
    """
    assert max_tile_s % _LANE == 0
    N, C_in, H, W = x_nchw.shape
    C_out = weight.shape[0]
    HW = H * W

    # ---- fold conv-bias + BN (eval stats) into weights / per-channel shift --
    inv_std = jax.lax.rsqrt(running_var.astype(jnp.float32) + eps)
    scale = gamma.astype(jnp.float32) * inv_std                     # (C_out,)
    w_scaled = weight.astype(jnp.float32) * scale[:, None]          # (C_out, C_in)
    shift = ((bias - running_mean) * scale + beta).reshape(C_out, 1).astype(
        jnp.float32)

    # NCHW view -> (N, C_in, H*W): pure reshape, no transpose / extra HBM pass.
    x3 = x_nchw.reshape(N, C_in, HW)

    nb, tile_s, grid = _choose_tiling(
        N, HW,
        max_tile_s=max_tile_s,
        target_block_bytes=target_block_bytes,
        bytes_per_col=(C_in + C_out) * 4)

    # Advisory cost estimate so XLA schedules around the call sensibly.
    flops = 2 * N * HW * C_in * C_out + 2 * N * HW * C_out
    bytes_accessed = 4 * (N * C_in * HW + N * C_out * HW
                          + C_out * C_in + C_out)
    cost = pl.CostEstimate(flops=flops, transcendentals=0,
                           bytes_accessed=bytes_accessed)

    out3 = pl.pallas_call(
        _elayer_kernel,
        out_shape=jax.ShapeDtypeStruct((N, C_out, HW), x_nchw.dtype),
        grid=grid,
        in_specs=[
            # activation tile: batch blocked, spatial on lanes
            pl.BlockSpec((nb, C_in, tile_s), lambda b, s: (b, 0, s)),
            # tiny constants: constant index_map -> fetched once, not per step
            pl.BlockSpec((C_out, C_in), lambda b, s: (0, 0)),
            pl.BlockSpec((C_out, 1), lambda b, s: (0, 0)),
        ],
        out_specs=pl.BlockSpec((nb, C_out, tile_s), lambda b, s: (b, 0, s)),
        compiler_params=pltpu.CompilerParams(
            dimension_semantics=("parallel", "parallel"),
            # Double-buffered footprint ~ 128 B * nb * tile_s (<~ 4-6 MiB with
            # the defaults); 32 MiB limit gives headroom on all generations
            # without exceeding v7x's 64 MiB physical VMEM.
            vmem_limit_bytes=32 * 1024 * 1024),
        cost_estimate=cost,
    )(x3, w_scaled, shift)

    return out3.reshape(N, C_out, H, W)


if __name__ == "__main__":
    # Small shapes consistent with the module: N=2, C_in=4, C_out=8, H=W=16
    N, C_in, C_out, H, W = 2, 4, 8, 16, 16

    key = jax.random.PRNGKey(0)
    k_x, k_w, k_b, k_g, k_be, k_m, k_v = jax.random.split(key, 7)

    x = jax.random.normal(k_x, (N, C_in, H, W), dtype=jnp.float32)

    # Deterministic synthetic parameters (no checkpoint load).
    weight = jax.random.normal(k_w, (C_out, C_in), dtype=jnp.float32) * 0.1
    bias = jax.random.normal(k_b, (C_out,), dtype=jnp.float32) * 0.1
    gamma = 1.0 + 0.1 * jax.random.normal(k_g, (C_out,), dtype=jnp.float32)
    beta = 0.1 * jax.random.normal(k_be, (C_out,), dtype=jnp.float32)
    running_mean = 0.05 * jax.random.normal(k_m, (C_out,), dtype=jnp.float32)
    running_var = 1.0 + 0.1 * jnp.abs(
        jax.random.normal(k_v, (C_out,), dtype=jnp.float32))
    # TODO(synk): PyTorch BatchNorm2d in train mode uses batch statistics; this
    # kernel implements the eval-mode forward with running stats.

    out = elayer_forward(x, weight, bias, gamma, beta, running_mean, running_var)
    jax.block_until_ready(out)

    # Pure-JAX reference of the fused semantics.
    eps = 1e-5
    conv_ref = jnp.einsum("nchw,oc->nohw", x, weight) + bias[None, :, None, None]
    bn_ref = (conv_ref - running_mean[None, :, None, None]) / jnp.sqrt(
        running_var[None, :, None, None] + eps) * gamma[None, :, None, None] \
        + beta[None, :, None, None]
    ref = jnp.maximum(bn_ref, 0.0)
    assert out.shape == (N, C_out, H, W)
    assert jnp.allclose(out, ref, atol=1e-4, rtol=1e-4)

    print("KERNEL_OK")
</pallas_src>

<mosaic_0001>
module attributes {stable_mosaic.version = 11 : i64} {
  func.func @_elayer_kernel(%arg0: i32, %arg1: i32, %arg2: memref<1x4x256xf32, #tpu.memory_space<vmem>>, %arg3: memref<8x4xf32, #tpu.memory_space<vmem>>, %arg4: memref<8x1xf32, #tpu.memory_space<vmem>>, %arg5: memref<1x8x256xf32, #tpu.memory_space<vmem>>) attributes {dimension_semantics = [#tpu.dimension_semantics<parallel>, #tpu.dimension_semantics<parallel>], iteration_bounds = array<i64: 2, 1>, scalar_prefetch = 0 : i64, scratch_operands = 0 : i64, tpu.core_type = #tpu.core_type<tc>, window_params = [{transform_indices = @transform_0, window_bounds = array<i64: 1, 4, 256>}, {pipeline_mode = #tpu.pipeline_mode<synchronous>, transform_indices = @transform_1, window_bounds = array<i64: 8, 4>}, {pipeline_mode = #tpu.pipeline_mode<synchronous>, transform_indices = @transform_2, window_bounds = array<i64: 8, 1>}, {transform_indices = @transform_3, window_bounds = array<i64: 1, 8, 256>}]} {
    %c0 = arith.constant 0 : index
    %c0_0 = arith.constant 0 : index
    %0 = vector.load %arg3[%c0, %c0_0] : memref<8x4xf32, #tpu.memory_space<vmem>>, vector<8x4xf32>
    %c0_1 = arith.constant 0 : index
    %c0_2 = arith.constant 0 : index
    %1 = vector.load %arg4[%c0_1, %c0_2] : memref<8x1xf32, #tpu.memory_space<vmem>>, vector<8x1xf32>
    %2 = vector.extract_strided_slice %0 {offsets = [0, 0], sizes = [8, 1], strides = [1, 1]} : vector<8x4xf32> to vector<8x1xf32>
    %3 = vector.shape_cast %2 : vector<8x1xf32> to vector<1x8x1xf32>
    %c0_3 = arith.constant 0 : index
    %c0_4 = arith.constant 0 : index
    %c0_5 = arith.constant 0 : index
    %4 = vector.load %arg2[%c0_3, %c0_4, %c0_5] : memref<1x4x256xf32, #tpu.memory_space<vmem>>, vector<1x1x256xf32>
    %5 = vector.broadcast %3 : vector<1x8x1xf32> to vector<1x8x256xf32>
    %6 = vector.broadcast %4 : vector<1x1x256xf32> to vector<1x8x256xf32>
    %7 = arith.mulf %5, %6 : vector<1x8x256xf32>
    %8 = vector.extract_strided_slice %0 {offsets = [0, 1], sizes = [8, 1], strides = [1, 1]} : vector<8x4xf32> to vector<8x1xf32>
    %9 = vector.shape_cast %8 : vector<8x1xf32> to vector<1x8x1xf32>
    %c0_6 = arith.constant 0 : index
    %c1 = arith.constant 1 : index
    %c0_7 = arith.constant 0 : index
    %10 = vector.load %arg2[%c0_6, %c1, %c0_7] : memref<1x4x256xf32, #tpu.memory_space<vmem>>, vector<1x1x256xf32>
    %11 = vector.broadcast %9 : vector<1x8x1xf32> to vector<1x8x256xf32>
    %12 = vector.broadcast %10 : vector<1x1x256xf32> to vector<1x8x256xf32>
    %13 = arith.mulf %11, %12 : vector<1x8x256xf32>
    %14 = arith.addf %7, %13 : vector<1x8x256xf32>
    %15 = vector.extract_strided_slice %0 {offsets = [0, 2], sizes = [8, 1], strides = [1, 1]} : vector<8x4xf32> to vector<8x1xf32>
    %16 = vector.shape_cast %15 : vector<8x1xf32> to vector<1x8x1xf32>
    %c0_8 = arith.constant 0 : index
    %c2 = arith.constant 2 : index
    %c0_9 = arith.constant 0 : index
    %17 = vector.load %arg2[%c0_8, %c2, %c0_9] : memref<1x4x256xf32, #tpu.memory_space<vmem>>, vector<1x1x256xf32>
    %18 = vector.broadcast %16 : vector<1x8x1xf32> to vector<1x8x256xf32>
    %19 = vector.broadcast %17 : vector<1x1x256xf32> to vector<1x8x256xf32>
    %20 = arith.mulf %18, %19 : vector<1x8x256xf32>
    %21 = arith.addf %14, %20 : vector<1x8x256xf32>
    %22 = vector.extract_strided_slice %0 {offsets = [0, 3], sizes = [8, 1], strides = [1, 1]} : vector<8x4xf32> to vector<8x1xf32>
    %23 = vector.shape_cast %22 : vector<8x1xf32> to vector<1x8x1xf32>
    %c0_10 = arith.constant 0 : index
    %c3 = arith.constant 3 : index
    %c0_11 = arith.constant 0 : index
    %24 = vector.load %arg2[%c0_10, %c3, %c0_11] : memref<1x4x256xf32, #tpu.memory_space<vmem>>, vector<1x1x256xf32>
    %25 = vector.broadcast %23 : vector<1x8x1xf32> to vector<1x8x256xf32>
    %26 = vector.broadcast %24 : vector<1x1x256xf32> to vector<1x8x256xf32>
    %27 = arith.mulf %25, %26 : vector<1x8x256xf32>
    %28 = arith.addf %21, %27 : vector<1x8x256xf32>
    %29 = vector.shape_cast %1 : vector<8x1xf32> to vector<1x8x1xf32>
    %30 = vector.broadcast %29 : vector<1x8x1xf32> to vector<1x8x256xf32>
    %31 = arith.addf %28, %30 : vector<1x8x256xf32>
    %cst = arith.constant 0.000000e+00 : f32
    %32 = vector.broadcast %cst : f32 to vector<1x8x256xf32>
    %33 = arith.maximumf %31, %32 : vector<1x8x256xf32>
    %c0_12 = arith.constant 0 : index
    %c0_13 = arith.constant 0 : index
    %c0_14 = arith.constant 0 : index
    %34 = vector.load %arg5[%c0_12, %c0_13, %c0_14] : memref<1x8x256xf32, #tpu.memory_space<vmem>>, vector<1x8x256xf32>
    tpu.vector_store %arg5[%c0_12, %c0_13, %c0_14], %33 {strides = array<i32>} : memref<1x8x256xf32, #tpu.memory_space<vmem>>, vector<1x8x256xf32>,
    return
  }
  func.func @transform_0(%arg0: i32, %arg1: i32) -> (i32, i32, i32) {
    %c0_i32 = arith.constant 0 : i32
    %c0_i32_0 = arith.constant 0 : i32
    return %arg0, %c0_i32, %arg1 : i32, i32, i32
  }
  func.func @transform_1(%arg0: i32, %arg1: i32) -> (i32, i32) {
    %c0_i32 = arith.constant 0 : i32
    %c0_i32_0 = arith.constant 0 : i32
    %c0_i32_1 = arith.constant 0 : i32
    return %c0_i32, %c0_i32_0 : i32, i32
  }
  func.func @transform_2(%arg0: i32, %arg1: i32) -> (i32, i32) {
    %c0_i32 = arith.constant 0 : i32
    %c0_i32_0 = arith.constant 0 : i32
    %c0_i32_1 = arith.constant 0 : i32
    return %c0_i32, %c0_i32_0 : i32, i32
  }
  func.func @transform_3(%arg0: i32, %arg1: i32) -> (i32, i32, i32) {
    %c0_i32 = arith.constant 0 : i32
    %c0_i32_0 = arith.constant 0 : i32
    return %arg0, %c0_i32, %arg1 : i32, i32, i32
  }
}

</mosaic_0001>

<bundles_post_ra>
// kernel: elayer_forward.1
= control target key start
LH: loop header
LB: loop body
LE: loop exit
PB: predicated region body
PF: predicated region fallthrough
CT: control target
= control target key end

     0   :  { %s490_s12 = smov 0   ;;  %s492_s13 = smov 0   ;;  %s533_s0 = inlined_call_operand.vmem [shape: f32[2,4,256], index: 0, kind: input, shape index: {}]   ;;  %s534_s1 = inlined_call_operand.vmem [shape: f32[8,4], index: 1, kind: input, shape index: {}]   ;;  %s535_s2 = inlined_call_operand.vmem [shape: f32[8,1], index: 2, kind: input, shape index: {}]   ;;  %s536_s3 = inlined_call_operand.vmem [shape: f32[2,8,256], index: 3, kind: output, shape index: {}]  }
   0x1   :  { %s494_s14 = smov 0  }
   0x2 LB: > { %s25_s15 = sadd.s32 1, %s460_s13  ;;  %p396_p0 = scmp.ge.s32.totalorder %s464_s14, 1  ;;  %s464_s14 = sphi %s494_s14, %s13_s14   ;;  %s460_s13 = sphi %s492_s13, %s538_s13   ;;  %s456_s12 = sphi %s490_s12, %s537_s12  }
   0x3   : > { %p27_p1 = scmp.ge.s32.totalorder %s25_s15, 2  ;;  %p158_p2 = scmp.lt.s32.totalorder %s464_s14, 3 }
   0x5   : > { %s540_s15 = smov (%p27_p1, %s25_s15), 0  ;;  %p159_p3 = pnand %p396_p0, %p158_p2 }
   0x6   : > { %p191_p4 = scmp.lt.s32.totalorder (!%p159_p3), %s456_s12, 1 }
   0x7   : > { %162 = sbr.rel (%p159_p3) target bundleno = 156 (0x9c), region = 32 }
   0xc   : > { %v210_v0 = vld [vmem:[%s534_s1] sm:$0xff]  ;;  %v466_v1 = vmov 0   ;;  %v467_v2 = vmov 2   ;;  %v468_v3 = vmov 1   ;;  %v469_v4 = vmov 3   ;;  %s542_s12 = smov (!%p191_p4, %s456_s12), 1 }
   0xd   : > { %436 = vset.pattern.permute.xlu0 %v466_v1  ;;  %438 = vset.pattern.permute.xlu1 %v467_v2  ;;  %v211_v5 = vld [vmem:[%s535_s2] sm:$0xff]  ;;  %v219_v6 = vlaneseq  ;;  %s406_s20 = sshll.u32 %s542_s12, 3  ;;  %s407_s24 = sshll.u32 %s542_s12, 4 }
   0xe   : > { %215 = vperm.xlu0 %436, %v210_v0   ;;  %255 = vperm.xlu1 %438, %v210_v0   ;;  %s198_s23 = scalar_lea.vmem %s533_s0, %s406_s20  ;;  %s208_s27 = scalar_lea.vmem %s536_s3, %s407_s24 }
   0xf   : > { %v220_v7 = vshrl.u32 %v219_v6, 7  ;;  %v212_v10 = vld [vmem:[%s198_s23] ss:$4 sm:$0x3] }
  0x10   : > { %v401_v11 = vld [vmem:[%s198_s23 + $0x1] ss:$4 sm:$0x3]  ;;  %v402_v14 = vld [vmem:[%s198_s23 + $0x2] ss:$4 sm:$0x3] }
  0x11   : > { %v221_v8 = vsub.s32 0, %v220_v7  ;;  %v225_v9 = vsub.s32 1, %v220_v7  ;;  %v403_v15 = vld [vmem:[%s198_s23 + $0x3] ss:$4 sm:$0x3] }
  0x12   : > { %437 = vset.pattern.permute.xlu0 %v468_v3  ;;  %439 = vset.pattern.permute.xlu1 %v469_v4 }
  0x13   : > { %234 = vperm.xlu0 %437, %v210_v0   ;;  %276 = vperm.xlu1 %439, %v210_v0   ;;  %v222_v16 = vrot.slane %v212_v10, %v221_v8  ;;  %v226_v17 = vrot.slane %v212_v10, %v225_v9  ;;  %v241_v18 = vrot.slane %v401_v11, %v221_v8 }
  0x14   : > { %v245_v19 = vrot.slane %v401_v11, %v225_v9  ;;  %v262_v20 = vrot.slane %v402_v14, %v221_v8  ;;  %v266_v21 = vrot.slane %v402_v14, %v225_v9  ;;  %v283_v22 = vrot.slane %v403_v15, %v221_v8 }
  0x15   : > { %v287_v23 = vrot.slane %v403_v15, %v225_v9 }
  0x17   : > { %440 = vset.pattern.permute.xlu1 %v466_v1  ;;  %441 = vset.pattern.permute.xlu0 %v466_v1 }
  0x18   : > { %296 = vperm.xlu1 %440, %v211_v5  }
  0x89   : > { %v216_v12 = vpop.permute.xlu0 %215  ;;  %v256_v13 = vpop.permute.xlu1 %255 }
  0x8a   : > { %v229_v26 = vmul.f32 %v222_v16, %v216_v12  ;;  %v230_v27 = vmul.f32 %v226_v17, %v216_v12  ;;  %v269_v30 = vmul.f32 %v262_v20, %v256_v13  ;;  %v270_v31 = vmul.f32 %v266_v21, %v256_v13 }
  0x8e   : > { %v235_v24 = vpop.permute.xlu0 %234  ;;  %v277_v25 = vpop.permute.xlu1 %276 }
  0x8f   : > { %v248_v28 = vmul.f32 %v241_v18, %v235_v24  ;;  %v249_v29 = vmul.f32 %v245_v19, %v235_v24  ;;  %v290_v34 = vmul.f32 %v283_v22, %v277_v25  ;;  %v291_v35 = vmul.f32 %v287_v23, %v277_v25 }
  0x91   : > { %v250_v32 = vadd.f32 %v248_v28, %v229_v26  ;;  %v251_v33 = vadd.f32 %v249_v29, %v230_v27 }
  0x93   : > { %v271_v36 = vadd.f32 %v269_v30, %v250_v32  ;;  %v272_v37 = vadd.f32 %v270_v31, %v251_v33  ;;  %v297_v38 = vpop.permute.xlu1 %296 }
  0x95   : > { %v292_v39 = vadd.f32 %v290_v34, %v271_v36  ;;  %v293_v40 = vadd.f32 %v291_v35, %v272_v37 }
  0x97   : > { %v299_v41 = vadd.f32 %v297_v38, %v292_v39  ;;  %v300_v42 = vadd.f32 %v297_v38, %v293_v40 }
  0x99   : > { %v301_v43 = vmax.f32 %v299_v41, 0.0  ;;  %v302_v44 = vmax.f32 %v300_v42, 0.0 }
  0x9b   : > { %303 = vst [vmem:[%s208_s27] sm:$0xff] %v301_v43  ;;  %304 = vst [vmem:[%s208_s27 + $0x8] sm:$0xff] %v302_v44 }
  0x9c PF: > { %s13_s14 = sadd.s32 1, %s464_s14   ;;  %s537_s12 = smov %s460_s13 }
  0x9d   : > { %p10_p5 = scmp.ge.s32.totalorder %s13_s14, 4   ;;  %s538_s13 = smov %s540_s15 }
  0x9f   :  { %12 = sbr.rel (!%p10_p5) target bundleno = 2 (0x2), region = 65 }

</bundles_post_ra>
